<compile_context>
chip_gen: v6e
topology: v6e:2x2x1
jax: 0.10.0
libtpu: 0.0.40
codegen_flags: <defaults>
</compile_context>

<pallas_src>
import functools

import jax
import jax.numpy as jnp
from jax import lax
from jax.experimental import pallas as pl
from jax.experimental.pallas import tpu as pltpu


_CHUNK_W_MAX = 4096      # accumulator / fold width (lanes)
_MAX_CHUNKS = 64         # static unroll bound of the in-kernel fold loop


# ---------------------------------------------------------------------------
# Kernels: fold spatial tiles into a resident (3, C, CHUNK_W) accumulator.
# acc_ref[:, 0] = sum x*y,  acc_ref[:, 1] = sum x,  acc_ref[:, 2] = sum y.
# ---------------------------------------------------------------------------

def _ji_partials_label_kernel(x_ref, lab_ref, acc_ref, *, n_chunks, chunk_w, n_ch):
    @pl.when(pl.program_id(2) == 0)
    def _init():
        acc_ref[...] = jnp.zeros_like(acc_ref)

    ch_iota = lax.broadcasted_iota(jnp.int32, (n_ch, chunk_w), 0)
    for j in range(n_chunks):                          # static, bounded unroll
        sl = slice(j * chunk_w, (j + 1) * chunk_w)
        xc = x_ref[0, :, sl].astype(jnp.float32)       # (C, W)
        lab = lab_ref[0, :, sl].astype(jnp.int32)      # (1, W), native dtype in HBM
        yc = (lab == ch_iota).astype(jnp.float32)      # (C, W) one-hot on the fly
        acc_ref[0, 0] += xc * yc
        acc_ref[0, 1] += xc
        acc_ref[0, 2] += yc


def _ji_partials_onehot_kernel(x_ref, y_ref, acc_ref, *, n_chunks, chunk_w, n_ch):
    del n_ch

    @pl.when(pl.program_id(2) == 0)
    def _init():
        acc_ref[...] = jnp.zeros_like(acc_ref)

    for j in range(n_chunks):                          # static, bounded unroll
        sl = slice(j * chunk_w, (j + 1) * chunk_w)
        xc = x_ref[0, :, sl].astype(jnp.float32)       # (C, W)
        yc = y_ref[0, :, sl].astype(jnp.float32)       # (C, W)
        acc_ref[0, 0] += xc * yc
        acc_ref[0, 1] += xc
        acc_ref[0, 2] += yc


# ---------------------------------------------------------------------------
# Tiling / VMEM budgeting (generation-aware)
# ---------------------------------------------------------------------------

def _vmem_budget_bytes():
    try:
        cap = int(pltpu.get_tpu_info().vmem_capacity_bytes)
    except Exception:
        cap = 64 * 1024 * 1024            # conservative (v7x-sized) fallback
    # ~32 MiB on v7x (64 MiB physical), ~64 MiB on v5e/v6e (128 MiB physical)
    return max(16 * 1024 * 1024, min(cap // 2, 64 * 1024 * 1024))


def _choose_tiling(S, C, x_itemsize, sec_itemsize, one_hot_path,
                   tile_lanes=None, chunk_lanes=None, spatial_splits=None):
    s_floor = (S // 128) * 128
    if s_floor == 0:
        return None                        # everything goes through the jnp tail path
    vmem_budget = _vmem_budget_bytes()

    x_bpl = C * x_itemsize
    sec_bpl = (C if one_hot_path else 1) * sec_itemsize
    combined = max(1, x_bpl + sec_bpl)     # HBM bytes per spatial lane (all streams)

    chunk_w = _CHUNK_W_MAX if chunk_lanes is None else int(chunk_lanes)
    chunk_w = max(128, (chunk_w // 128) * 128)

    if tile_lanes is None:
        lanes = min((2 * vmem_budget // 5) // combined,   # 2x-buffered inputs <= ~80% budget
                    (8 << 20) // combined,                 # ~8 MiB of HBM traffic per step
                    _MAX_CHUNKS * chunk_w)                 # bounded static unroll
    else:
        lanes = int(tile_lanes)
    lanes = min(max(128, (lanes // 128) * 128), s_floor)

    chunk_w = min(chunk_w, lanes)
    n_chunks = max(1, lanes // chunk_w)
    tile_s = n_chunks * chunk_w

    n_main = S // tile_s                   # whole tiles only; remainder -> wrapper tail
    if spatial_splits is None:
        n_split = 2 if n_main >= 2 else 1  # keeps both v7x TensorCores busy for B == 1
    else:
        n_split = max(1, min(int(spatial_splits), n_main))
    n_per = n_main // n_split
    return dict(tile_s=tile_s, chunk_w=chunk_w, n_chunks=n_chunks,
                n_split=n_split, n_per=n_per, vmem_budget=vmem_budget)


# ---------------------------------------------------------------------------
# Wrapper
# ---------------------------------------------------------------------------

def ji_loss(x, y, smooth=1.0, batch_dice=False, do_bg=True,
            tile_lanes=None, chunk_lanes=None, spatial_splits=None):
    """x: (B, C, *spatial) float probabilities/logits (apply_nonlin=None).
    y: same shape as x (one-hot float) OR an integer label map of shape
    (B, *spatial) / (B, 1, *spatial).  The last three kwargs are tuning /
    testing overrides for the auto-chosen tiling."""
    B, C = int(x.shape[0]), int(x.shape[1])
    S = 1
    for d in x.shape[2:]:
        S *= int(d)

    x3 = x.reshape(B, C, S)                                   # contiguous reshape: free
    one_hot_path = tuple(y.shape) == tuple(x.shape)
    if one_hot_path:
        second = y.reshape(B, C, S)
    else:
        second = y.reshape(B, 1, S)                           # label map, native dtype

    cfg = _choose_tiling(S, C, jnp.dtype(x3.dtype).itemsize,
                         jnp.dtype(second.dtype).itemsize, one_hot_path,
                         tile_lanes, chunk_lanes, spatial_splits)

    if cfg is not None:
        tile_s, chunk_w = cfg["tile_s"], cfg["chunk_w"]
        n_chunks, n_split, n_per = cfg["n_chunks"], cfg["n_split"], cfg["n_per"]
        s_main = n_split * n_per * tile_s

        x_spec = pl.BlockSpec((1, C, tile_s), lambda b, p, k: (b, 0, p * n_per + k))
        if one_hot_path:
            kernel = functools.partial(_ji_partials_onehot_kernel,
                                       n_chunks=n_chunks, chunk_w=chunk_w, n_ch=C)
            sec_spec = pl.BlockSpec((1, C, tile_s), lambda b, p, k: (b, 0, p * n_per + k))
        else:
            kernel = functools.partial(_ji_partials_label_kernel,
                                       n_chunks=n_chunks, chunk_w=chunk_w, n_ch=C)
            sec_spec = pl.BlockSpec((1, 1, tile_s), lambda b, p, k: (b, 0, p * n_per + k))
        acc_spec = pl.BlockSpec((1, 3, C, chunk_w),
                                lambda b, p, k: (b * n_split + p, 0, 0, 0))

        parts = pl.pallas_call(
            kernel,
            grid=(B, n_split, n_per),
            in_specs=[x_spec, sec_spec],
            out_specs=acc_spec,
            out_shape=jax.ShapeDtypeStruct((B * n_split, 3, C, chunk_w), jnp.float32),
            compiler_params=pltpu.CompilerParams(
                dimension_semantics=("parallel", "parallel", "arbitrary"),
                vmem_limit_bytes=int(cfg["vmem_budget"]),
            ),
        )(x3, second)

        # Tiny finalize: narrow accumulators -> single cross-lane reduce in JAX.
        parts = parts.reshape(B, n_split, 3, C, chunk_w).sum(axis=(1, 4))   # (B, 3, C)
        tp, sx, sy = parts[:, 0], parts[:, 1], parts[:, 2]
    else:
        s_main = 0
        tp = sx = sy = jnp.zeros((B, C), jnp.float32)

    if s_main < S:
        # Ragged spatial tail (< one tile): fused slice+reduce in XLA, no padding copy.
        xt = x3[:, :, s_main:].astype(jnp.float32)
        if one_hot_path:
            yt = second[:, :, s_main:].astype(jnp.float32)
        else:
            labs = second[:, :, s_main:].astype(jnp.int32)
            yt = (labs == jnp.arange(C, dtype=jnp.int32)[None, :, None]).astype(jnp.float32)
        tp = tp + jnp.sum(xt * yt, axis=-1)
        sx = sx + jnp.sum(xt, axis=-1)
        sy = sy + jnp.sum(yt, axis=-1)

    fp = sx - tp
    fn = sy - tp
    if batch_dice:
        tp, fp, fn = tp.sum(0), fp.sum(0), fn.sum(0)
    dc = (tp + smooth) / (tp + fp + fn + smooth)
    if not do_bg:
        dc = dc[1:] if batch_dice else dc[:, 1:]
    return -jnp.mean(dc)


# ---------------------------------------------------------------------------
# Pure-JAX reference matching the PyTorch forward (default args)
# ---------------------------------------------------------------------------

def ji_loss_reference(x, y, smooth=1.0):
    B, C = x.shape[0], x.shape[1]
    spatial = x.shape[2:]
    if tuple(y.shape) != tuple(x.shape):
        labels = y.reshape((B,) + tuple(spatial)).astype(jnp.int32)
        y = jnp.moveaxis(jax.nn.one_hot(labels, C, dtype=x.dtype), -1, 1)
    axes = tuple(range(2, x.ndim))
    xf = x.astype(jnp.float32)
    yf = y.astype(jnp.float32)
    tp = jnp.sum(xf * yf, axis=axes)
    fp = jnp.sum(xf * (1.0 - yf), axis=axes)
    fn = jnp.sum((1.0 - xf) * yf, axis=axes)
    dc = (tp + smooth) / (tp + fp + fn + smooth)
    return -jnp.mean(dc)


if __name__ == "__main__":
    key = jax.random.PRNGKey(0)
    k1, k2, k3, k4, k5, k6 = jax.random.split(key, 6)

    # Test 1: int32 label-map target (one-hot built in-kernel), S % 128 == 0.
    B, C, H, W = 2, 4, 16, 16
    x = jax.nn.softmax(jax.random.normal(k1, (B, C, H, W), dtype=jnp.float32), axis=1)
    y = jax.random.randint(k2, (B, H, W), 0, C)
    out = jax.block_until_ready(ji_loss(x, y, smooth=1.0))
    ref = jax.block_until_ready(ji_loss_reference(x, y, smooth=1.0))
    assert jnp.allclose(out, ref, atol=1e-5, rtol=1e-5), (out, ref)

    # Test 2: one-hot float target, odd spatial size (exercises the jnp tail path).
    B2, C2, H2, W2 = 2, 4, 17, 17
    x2 = jax.nn.softmax(jax.random.normal(k3, (B2, C2, H2, W2), dtype=jnp.float32), axis=1)
    lab2 = jax.random.randint(k4, (B2, H2, W2), 0, C2)
    y2 = jnp.moveaxis(jax.nn.one_hot(lab2, C2, dtype=x2.dtype), -1, 1)
    out2 = jax.block_until_ready(ji_loss(x2, y2, smooth=1.0))
    ref2 = jax.block_until_ready(ji_loss_reference(x2, y2, smooth=1.0))
    assert jnp.allclose(out2, ref2, atol=1e-5, rtol=1e-5), (out2, ref2)

    # Test 3: bf16 probs + uint8 3-D label map with forced small tiles:
    # exercises multi-chunk folding, multi-tile accumulation, the 2-way
    # spatial split and the ragged tail together.
    B3, C3, D3, H3, W3 = 2, 3, 8, 24, 24          # S = 4608
    x3_ = jax.nn.softmax(jax.random.normal(k5, (B3, C3, D3, H3, W3), jnp.float32),
                         axis=1).astype(jnp.bfloat16)
    y3_ = jax.random.randint(k6, (B3, D3, H3, W3), 0, C3).astype(jnp.uint8)
    out3 = jax.block_until_ready(
        ji_loss(x3_, y3_, smooth=1.0, tile_lanes=1024, chunk_lanes=256, spatial_splits=2))
    ref3 = jax.block_until_ready(ji_loss_reference(x3_, y3_, smooth=1.0))
    assert jnp.allclose(out3, ref3, atol=1e-4, rtol=1e-4), (out3, ref3)

    print("KERNEL_OK")
</pallas_src>

<mosaic_0001>
module attributes {stable_mosaic.version = 11 : i64} {
  func.func @_ji_partials_label_kernel(%arg0: i32, %arg1: i32, %arg2: i32, %arg3: memref<1x4x256xf32, #tpu.memory_space<vmem>>, %arg4: memref<1x1x256xi32, #tpu.memory_space<vmem>>, %arg5: memref<1x3x4x256xf32, #tpu.memory_space<vmem>>) attributes {dimension_semantics = [#tpu.dimension_semantics<parallel>, #tpu.dimension_semantics<parallel>, #tpu.dimension_semantics<arbitrary>], iteration_bounds = array<i64: 2, 1, 1>, scalar_prefetch = 0 : i64, scratch_operands = 0 : i64, tpu.core_type = #tpu.core_type<tc>, window_params = [{transform_indices = @transform_0, window_bounds = array<i64: 1, 4, 256>}, {transform_indices = @transform_1, window_bounds = array<i64: 1, 1, 256>}, {transform_indices = @transform_2, window_bounds = array<i64: 1, 3, 4, 256>}]} {
    %c0_i32 = arith.constant 0 : i32
    %0 = arith.cmpi eq, %arg2, %c0_i32 : i32
    %1 = arith.extui %0 : i1 to i32
    %c0_i32_0 = arith.constant 0 : i32
    %2 = arith.cmpi ne, %1, %c0_i32_0 : i32
    scf.if %2 {
      %cst = arith.constant 0.000000e+00 : f32
      %31 = vector.broadcast %cst : f32 to vector<1x3x4x256xf32>
      %c0_28 = arith.constant 0 : index
      %c0_29 = arith.constant 0 : index
      %c0_30 = arith.constant 0 : index
      %c0_31 = arith.constant 0 : index
      %32 = vector.load %arg5[%c0_28, %c0_29, %c0_30, %c0_31] : memref<1x3x4x256xf32, #tpu.memory_space<vmem>>, vector<1x3x4x256xf32>
      tpu.vector_store %arg5[%c0_28, %c0_29, %c0_30, %c0_31], %31 {strides = array<i32>} : memref<1x3x4x256xf32, #tpu.memory_space<vmem>>, vector<1x3x4x256xf32>,
    } else {
    }
    %3 = tpu.iota {dimensions = array<i32: 0>} : vector<4x256xi32>
    %c0 = arith.constant 0 : index
    %c0_1 = arith.constant 0 : index
    %c0_2 = arith.constant 0 : index
    %4 = vector.load %arg3[%c0, %c0_1, %c0_2] : memref<1x4x256xf32, #tpu.memory_space<vmem>>, vector<1x4x256xf32>
    %5 = vector.shape_cast %4 : vector<1x4x256xf32> to vector<4x256xf32>
    %c0_3 = arith.constant 0 : index
    %c0_4 = arith.constant 0 : index
    %c0_5 = arith.constant 0 : index
    %6 = vector.load %arg4[%c0_3, %c0_4, %c0_5] : memref<1x1x256xi32, #tpu.memory_space<vmem>>, vector<1x1x256xi32>
    %7 = vector.shape_cast %6 : vector<1x1x256xi32> to vector<1x256xi32>
    %8 = vector.broadcast %7 : vector<1x256xi32> to vector<4x256xi32>
    %9 = arith.cmpi eq, %8, %3 : vector<4x256xi32>
    %10 = arith.extui %9 : vector<4x256xi1> to vector<4x256xi32>
    %11 = arith.sitofp %10 : vector<4x256xi32> to vector<4x256xf32>
    %c0_6 = arith.constant 0 : index
    %c0_7 = arith.constant 0 : index
    %c0_8 = arith.constant 0 : index
    %c0_9 = arith.constant 0 : index
    %12 = vector.load %arg5[%c0_6, %c0_7, %c0_8, %c0_9] : memref<1x3x4x256xf32, #tpu.memory_space<vmem>>, vector<1x1x4x256xf32>
    %13 = vector.shape_cast %12 : vector<1x1x4x256xf32> to vector<4x256xf32>
    %14 = arith.mulf %5, %11 : vector<4x256xf32>
    %15 = arith.addf %13, %14 : vector<4x256xf32>
    %c0_10 = arith.constant 0 : index
    %c0_11 = arith.constant 0 : index
    %c0_12 = arith.constant 0 : index
    %c0_13 = arith.constant 0 : index
    %16 = vector.load %arg5[%c0_10, %c0_11, %c0_12, %c0_13] : memref<1x3x4x256xf32, #tpu.memory_space<vmem>>, vector<1x1x4x256xf32>
    %17 = vector.shape_cast %16 : vector<1x1x4x256xf32> to vector<4x256xf32>
    %18 = vector.shape_cast %15 : vector<4x256xf32> to vector<1x1x4x256xf32>
    tpu.vector_store %arg5[%c0_10, %c0_11, %c0_12, %c0_13], %18 {strides = array<i32>} : memref<1x3x4x256xf32, #tpu.memory_space<vmem>>, vector<1x1x4x256xf32>,
    %c0_14 = arith.constant 0 : index
    %c1 = arith.constant 1 : index
    %c0_15 = arith.constant 0 : index
    %c0_16 = arith.constant 0 : index
    %19 = vector.load %arg5[%c0_14, %c1, %c0_15, %c0_16] : memref<1x3x4x256xf32, #tpu.memory_space<vmem>>, vector<1x1x4x256xf32>
    %20 = vector.shape_cast %19 : vector<1x1x4x256xf32> to vector<4x256xf32>
    %21 = arith.addf %20, %5 : vector<4x256xf32>
    %c0_17 = arith.constant 0 : index
    %c1_18 = arith.constant 1 : index
    %c0_19 = arith.constant 0 : index
    %c0_20 = arith.constant 0 : index
    %22 = vector.load %arg5[%c0_17, %c1_18, %c0_19, %c0_20] : memref<1x3x4x256xf32, #tpu.memory_space<vmem>>, vector<1x1x4x256xf32>
    %23 = vector.shape_cast %22 : vector<1x1x4x256xf32> to vector<4x256xf32>
    %24 = vector.shape_cast %21 : vector<4x256xf32> to vector<1x1x4x256xf32>
    tpu.vector_store %arg5[%c0_17, %c1_18, %c0_19, %c0_20], %24 {strides = array<i32>} : memref<1x3x4x256xf32, #tpu.memory_space<vmem>>, vector<1x1x4x256xf32>,
    %c0_21 = arith.constant 0 : index
    %c2 = arith.constant 2 : index
    %c0_22 = arith.constant 0 : index
    %c0_23 = arith.constant 0 : index
    %25 = vector.load %arg5[%c0_21, %c2, %c0_22, %c0_23] : memref<1x3x4x256xf32, #tpu.memory_space<vmem>>, vector<1x1x4x256xf32>
    %26 = vector.shape_cast %25 : vector<1x1x4x256xf32> to vector<4x256xf32>
    %27 = arith.addf %26, %11 : vector<4x256xf32>
    %c0_24 = arith.constant 0 : index
    %c2_25 = arith.constant 2 : index
    %c0_26 = arith.constant 0 : index
    %c0_27 = arith.constant 0 : index
    %28 = vector.load %arg5[%c0_24, %c2_25, %c0_26, %c0_27] : memref<1x3x4x256xf32, #tpu.memory_space<vmem>>, vector<1x1x4x256xf32>
    %29 = vector.shape_cast %28 : vector<1x1x4x256xf32> to vector<4x256xf32>
    %30 = vector.shape_cast %27 : vector<4x256xf32> to vector<1x1x4x256xf32>
    tpu.vector_store %arg5[%c0_24, %c2_25, %c0_26, %c0_27], %30 {strides = array<i32>} : memref<1x3x4x256xf32, #tpu.memory_space<vmem>>, vector<1x1x4x256xf32>,
    return
  }
  func.func @transform_0(%arg0: i32, %arg1: i32, %arg2: i32) -> (i32, i32, i32) {
    %c1_i32 = arith.constant 1 : i32
    %0 = arith.muli %arg1, %c1_i32 : i32
    %1 = arith.addi %0, %arg2 : i32
    %c0_i32 = arith.constant 0 : i32
    %c0_i32_0 = arith.constant 0 : i32
    return %arg0, %c0_i32, %1 : i32, i32, i32
  }
  func.func @transform_1(%arg0: i32, %arg1: i32, %arg2: i32) -> (i32, i32, i32) {
    %c1_i32 = arith.constant 1 : i32
    %0 = arith.muli %arg1, %c1_i32 : i32
    %1 = arith.addi %0, %arg2 : i32
    %c0_i32 = arith.constant 0 : i32
    %c0_i32_0 = arith.constant 0 : i32
    return %arg0, %c0_i32, %1 : i32, i32, i32
  }
  func.func @transform_2(%arg0: i32, %arg1: i32, %arg2: i32) -> (i32, i32, i32, i32) {
    %c1_i32 = arith.constant 1 : i32
    %0 = arith.muli %arg0, %c1_i32 : i32
    %1 = arith.addi %0, %arg1 : i32
    %c0_i32 = arith.constant 0 : i32
    %c0_i32_0 = arith.constant 0 : i32
    %c0_i32_1 = arith.constant 0 : i32
    %c0_i32_2 = arith.constant 0 : i32
    return %1, %c0_i32, %c0_i32_0, %c0_i32_1 : i32, i32, i32, i32
  }
}

</mosaic_0001>

<bundles_post_ra>
// kernel: tpu_custom_call.1
= control target key start
LH: loop header
LB: loop body
LE: loop exit
PB: predicated region body
PF: predicated region fallthrough
CT: control target
= control target key end

     0   :  { %7 = vsyncpa [#allocation3], 0  ;;  %s848_s0 = inlined_call_operand.hbm [shape: f32[2,4,256], index: 0, kind: input, shape index: {}]   ;;  %s849_s1 = inlined_call_operand.hbm [shape: s32[2,1,256], index: 1, kind: input, shape index: {}]   ;;  %s850_s2 = inlined_call_operand.hbm [shape: f32[2,3,4,256], index: 2, kind: output, shape index: {}]  }
   0x1   :  { %9 = vsyncpa [#allocation3 + $0x1], 0 }
   0x2   :  { %10 = vsyncpa [#allocation6], 0 }
   0x3   :  { %12 = vsyncpa [#allocation6 + $0x1], 0 }
   0x4   :  { %13 = vsyncpa [#allocation4], 0 }
   0x5   :  { %15 = vsyncpa [#allocation4 + $0x1], 0  ;;  %s669_s9 = smov 0   ;;  %s671_s10 = smov 0  }
   0x6   :  { %s673_s11 = smov 0   ;;  %s675_s12 = smov 0  }
   0x7   :  { %s677_s13 = smov 0   ;;  %s679_s14 = smov 0  }
   0x8 LB: > { %s410_s15 = sadd.s32 4294967295, %s646_s14   ;;  %s411_s16 = sadd.s32 4294967294, %s646_s14   ;;  %s646_s14 = sphi %s679_s14, %s21_s14   ;;  %s642_s13 = sphi %s677_s13, %s862_s13   ;;  %s638_s12 = sphi %s675_s12, %s861_s12   ;;  %s634_s11 = sphi %s673_s11, %s860_s11   ;;  %s630_s10 = sphi %s671_s10, %s859_s10   ;;  %s626_s9 = sphi %s669_s9, %s858_s9  }
   0x9   : > { %s40_s17 = sadd.s32 1, %s642_s13  ;;  %s51_s18 = sadd.s32 1, %s634_s11 }
   0xa   : > { %p42_p0 = scmp.ge.s32.totalorder %s40_s17, 2  ;;  %p58_p1 = scmp.ne.s32.totalorder %s634_s11, %s630_s10 }
   0xb   : > { %p59_p2 = scmp.eq.s32.totalorder %s646_s14, 0  ;;  %p64_p3 = scmp.ne.s32.totalorder %s630_s10, %s626_s9 }
   0xc   : > { %s864_s17 = smov (%p42_p0, %s40_s17), 0  ;;  %p65_p5 = scmp.eq.s32.totalorder %s410_s15, 0 }
   0xd   : > { %p710_p4 = por %p59_p2, %p58_p1  ;;  %s46_s20 = ssub.s32 %s642_s13, %s864_s17 }
   0xe   : > { %p120_p6 = scmp.eq.s32.totalorder %s410_s15, 1  ;;  %p49_p7 = scmp.eq.s32.totalorder %s46_s20, 0 }
   0xf   : > { %p716_p8 = por %p65_p5, %p64_p3  ;;  %p126_p10 = scmp.eq.s32.totalorder %s411_s16, 1 }
  0x10   : > { %p720_p9 = por %p120_p6, %p58_p1  ;;  %p453_p13 = scmp.lt.s32.totalorder %s646_s14, 2 }
  0x11   : > { %s725_s23 = scalar_select %p49_p7, %s634_s11, %s51_s18  }
  0x12   : > { %p727_p11 = por %p126_p10, %p64_p3  ;;  %s734_s25 = sand.u32 1, %s634_s11  }
  0x13   : > { %s414_s26 = sshll.u32 %s734_s25, 3  ;;  %s432_s27 = sshll.u32 %s642_s13, 7 }
  0x14   : > { %s159_s30 = scalar_lea.hbm %s848_s0, %s432_s27  ;;  %s150_s3 = scalar_lea.vmem [#allocation2], %s414_s26 }
  0x15   : > { %s161_s4 = sshll.u32 %s150_s3, 4  ;;  %p743_p0 = pnand %p453_p13, %p710_p4  ;;  %s162_s4 = int_to_ptr.vmem [resolvable:$true] %s161_s4 }
  0x16   : > { %p420_p1 = scmp.ge.s32.totalorder %s646_s14, 1  ;;  %p188_p2 = scmp.lt.s32.totalorder %s646_s14, 3 }
  0x17   : > { %s147_s6 = scalar_lea.sflag [#allocation3], %s734_s25  ;;  %p508_p3 = pneg %p743_p0 }
  0x18   : > { %s519_s7 = scalar_lea.vmem %s162_s4, 128  ;;  %s648_s8 = smov [#allocation2]  }
  0x19   : > { %p520_p5 = scmp.ne.s32.totalorder %s162_s4, %s519_s7  ;;  %s524_s15 = sshll.u32 %s648_s8, 4  ;;  %s525_s15 = int_to_ptr.vmem [resolvable:$false] %s524_s15 }
  0x1a   : > { %s526_s16 = scalar_lea.vmem %s525_s15, 256  ;;  %p527_p4 = scmp.lt.s32.totalorder %s162_s4, %s525_s15 }
  0x1b   : > { %p522_p6 = pnand %p520_p5, %p508_p3  ;;  %p528_p10 = scmp.lt.s32.totalorder %s526_s16, %s519_s7 }
  0x1d   : > { %p523_p7 = pneg %p522_p6  ;;  %p529_p13 = por %p528_p10, %p527_p4 }
  0x1f   : > { %p530_p12 = pnand %p529_p13, %p523_p7 }
  0x21   : > { %533 = shalt.err (!%p530_p12)
}
  0x22   : > { %445 = dma.hbm_to_vmem [thread:$0]  (!%p743_p0), %s159_s30, 128, %s162_s4, %s147_s6  }
  0x23   : > { %p761_p5 = pnand %p420_p1, %p188_p2  ;;  %s417_s19 = sshll.u32 %s734_s25, 1 }
  0x24   : > { %s433_s20 = sshll.u32 %s642_s13, 5  ;;  %s172_s29 = scalar_lea.vmem [#allocation5], %s417_s19 }
  0x25   : > { %s181_s28 = scalar_lea.hbm %s849_s1, %s433_s20  ;;  %s183_s3 = sshll.u32 %s172_s29, 4  ;;  %s184_s3 = int_to_ptr.vmem [resolvable:$true] %s183_s3 }
  0x26   : > { %s169_s7 = scalar_lea.sflag [#allocation6], %s734_s25  ;;  %s547_s8 = scalar_lea.vmem %s184_s3, 32 }
  0x27   : > { %p548_p12 = scmp.ne.s32.totalorder %s184_s3, %s547_s8  ;;  %s649_s30 = smov [#allocation5]  }
  0x28   : > { %s552_s4 = sshll.u32 %s649_s30, 4  ;;  %s553_s4 = int_to_ptr.vmem [resolvable:$false] %s552_s4 }
  0x29   : > { %p550_p6 = pnand %p548_p12, %p508_p3  ;;  %s554_s6 = scalar_lea.vmem %s553_s4, 64 }
  0x2a   : > { %p555_p1 = scmp.lt.s32.totalorder %s184_s3, %s553_s4  ;;  %p556_p2 = scmp.lt.s32.totalorder %s554_s6, %s547_s8 }
  0x2b   : > { %p551_p7 = pneg %p550_p6 }
  0x2c   : > { %p557_p4 = por %p556_p2, %p555_p1 }
  0x2e   : > { %p558_p10 = pnand %p557_p4, %p551_p7 }
  0x30   : > { %561 = shalt.err (!%p558_p10)
}
  0x31   : > { %448 = dma.hbm_to_vmem [thread:$0]  (!%p743_p0), %s181_s28, 32, %s184_s3, %s169_s7  }
  0x32   : > { %192 = sbr.rel (%p761_p5) target bundleno = 87 (0x57), region = 28  ;;  %s779_s25 = sand.u32 (!%p761_p5), 1, %s630_s10  }
  0x33   : > { %s421_s15 = sshll.u32 (!%p761_p5), %s779_s25, 3  ;;  %s195_s16 = scalar_lea.sflag (!%p761_p5), [#allocation3], %s779_s25 }
  0x34   : > { %s198_s19 = scalar_lea.vmem (!%p761_p5), [#allocation2], %s421_s15 }
  0x37   : > { %613 = dma.done.wait (%p716_p8), %s195_s16, 128  }
  0x38   : > { %615 = vsyncadd (%p716_p8), %s195_s16, 4294967168  ;;  %s422_s5 = sshll.u32 %s779_s25, 1  ;;  %s204_s18 = scalar_lea.sflag [#allocation6], %s779_s25 }
  0x39   : > { %s207_s20 = scalar_lea.vmem [#allocation5], %s422_s5 }
  0x3a   : > { %617 = dma.done.wait (%p716_p8), %s204_s18, 32  }
  0x3b   : > { %619 = vsyncadd (%p716_p8), %s204_s18, 4294967264  ;;  %v245_v0 = vlaneseq  ;;  %s434_s26 = smul.u32 24, %s779_s25  ;;  %v247_v4 = vld [vmem:[%s198_s19] sm:$0xff]  ;;  %v248_v5 = vld [vmem:[%s207_s20] sm:$0x3]  ;;  %v650_v8 = vmov 0.0  }
  0x3c   : > { %s435_s21 = smul.u32 384, %s638_s12  ;;  %s280_s8 = scalar_lea.sflag [#allocation4], %s779_s25 }
  0x3d   : > { %v246_v1 = vshrl.u32 %v245_v0, 7  ;;  %s232_s27 = scalar_lea.vmem [#allocation7], %s434_s26  ;;  %s651_s12 = smov [#allocation7]  }
  0x3e   : > { %426 = vst [vmem:[%s232_s27 + $0x8] sm:$0xff] %v247_v4  ;;  %s294_s28 = sshll.u32 %s232_s27, 4  ;;  %s798_s7 = scalar_lea.hbm %s850_s2, %s435_s21  ;;  %s800_s28 = int_to_ptr.vmem [resolvable:$true] %s294_s28 }
  0x3f   : > { %v251_v2 = vsub.s32 0, %v246_v1  ;;  %v255_v3 = vsub.s32 1, %v246_v1  ;;  %s562_s30 = scalar_lea.vmem %s800_s28, 384  ;;  %s566_s4 = sshll.u32 %s651_s12, 4  ;;  %s567_s4 = int_to_ptr.vmem [resolvable:$false] %s566_s4 }
  0x40   : > { %p563_p8 = scmp.ne.s32.totalorder %s800_s28, %s562_s30  ;;  %s568_s6 = scalar_lea.vmem %s567_s4, 768 }
  0x41   : > { %v252_v6 = vrot.slane %v248_v5, %v251_v2  ;;  %v256_v7 = vrot.slane %v248_v5, %v255_v3  ;;  %p569_p13 = scmp.lt.s32.totalorder %s800_s28, %s567_s4  ;;  %p570_p5 = scmp.lt.s32.totalorder %s568_s6, %s562_s30 }
  0x42   : > { %p564_p0 = pnand %p563_p8, %p720_p9 }
  0x43   : > { %vm257_vm0 = vcmp.eq.s32.totalorder %v252_v6, %v246_v1  ;;  %vm258_vm1 = vcmp.eq.s32.totalorder %v256_v7, %v246_v1  ;;  %p571_p12 = por %p570_p5, %p569_p13 }
  0x44   : > { %v423_v9 = vsel %vm257_vm0, 1.0, %v650_v8  ;;  %v424_v10 = vsel %vm258_vm1, 1.0, %v650_v8  ;;  %p565_p3 = pneg %p564_p0 }
  0x45   : > { %v266_v11 = vcombine.low %v423_v9, %v424_v10 }
  0x46   : > { %p572_p6 = pnand %p571_p12, %p565_p3 }
  0x47   : > { %v268_v12 = vmul.f32 %v266_v11, %v247_v4  ;;  %428 = vst [vmem:[%s232_s27 + $0x10] sm:$0xff] %v266_v11 }
  0x49   : > { %270 = vst [vmem:[%s232_s27] sm:$0xff] %v268_v12 }
  0x4a   : > { %575 = shalt.err (!%p572_p6)
}
  0x4b   : > { %s576_s15 = scalar_lea.hbm %s798_s7, 384  ;;  %s580_s5 = scalar_lea.hbm %s850_s2, 768 }
  0x4c   : > { %p577_p7 = scmp.ne.s32.totalorder %s798_s7, %s576_s15  ;;  %p581_p4 = scmp.lt.s32.totalorder %s798_s7, %s850_s2 }
  0x4d   : > { %p582_p10 = scmp.lt.s32.totalorder %s580_s5, %s576_s15 }
  0x4e   : > { %p578_p1 = pnand %p577_p7, %p720_p9 }
  0x4f   : > { %p583_p8 = por %p582_p10, %p581_p4 }
  0x50   : > { %p579_p2 = pneg %p578_p1 }
  0x52   : > { %p584_p0 = pnand %p583_p8, %p579_p2 }
  0x54   : > { %587 = shalt.err (!%p584_p0)
}
  0x55   : > { %s652_s26 = smov 128   ;;  %s653_s27 = smov 8  }
  0x56   : > { %440 = dma.vmem_to_hbm [thread:$0]  (%p720_p9), %s800_s28, 384, %s798_s7, %s280_s8, %s652_s26, %s652_s26, %s653_s27  }
  0x57 PF: > { %s309_s21 = sand.u32 1, %s626_s9   ;;  %p857_p3 = scmp.ge.s32.totalorder %s646_s14, 2 }
  0x58   : > { %s310_s29 = scalar_lea.sflag [#allocation4], %s309_s21 }
  0x59   : > { %p450_p13 = pnand %p857_p3, %p727_p11 }
  0x5b   : > { %p451_p5 = pneg %p450_p13 }
  0x5d   : > { %621 = dma.done.wait (%p451_p5), %s310_s29, 384  }
  0x5e   : > { %623 = vsyncadd (%p451_p5), %s310_s29, 4294966912  ;;  %s21_s14 = sadd.s32 1, %s646_s14   ;;  %s858_s9 = smov %s630_s10 }
  0x5f   : > { %p18_p12 = scmp.ge.s32.totalorder %s21_s14, 4   ;;  %s859_s10 = smov %s634_s11 }
  0x60   : > { %s860_s11 = smov %s725_s23  ;;  %s861_s12 = smov %s642_s13 }
  0x61   : > { %s862_s13 = smov %s864_s17  ;;  %20 = sbr.rel (!%p18_p12) target bundleno = 8 (0x8), region = 92 }
  0x66   :  { %315 = vsyncpa [#allocation3], 1 }
  0x67   :  { %317 = vsyncpa [#allocation3 + $0x1], 1 }
  0x68   :  { %318 = vsyncpa [#allocation6], 1 }
  0x69   :  { %320 = vsyncpa [#allocation6 + $0x1], 1 }
  0x6a   :  { %321 = vsyncpa [#allocation4], 1 }
  0x6b   :  { %323 = vsyncpa [#allocation4 + $0x1], 1 }

</bundles_post_ra>
